<compile_context>
chip_gen: v5e
topology: v5e:2x2
jax: 0.10.0
libtpu: 0.0.40
codegen_flags: <defaults>
</compile_context>

<pallas_src>
import functools

import jax
import jax.numpy as jnp
from jax.experimental import pallas as pl
from jax.experimental.pallas import tpu as pltpu


_KERNEL_SIZES = (5, 6, 9)   # multi_3 / multi_5 / multi_7
_MAX_BATCH_TILE = 8         # unrolled per-sample loop; grid >= 2 for B > 8


# ---------------------------------------------------------------------------
# static helpers (trace-time python, shared by kernel and reference)
# ---------------------------------------------------------------------------
def _adaptive_pool_bounds(L_in: int, L_out: int):
    """PyTorch adaptive pooling segment boundaries: [start, end) per output."""
    bounds = []
    for i in range(L_out):
        start = (i * L_in) // L_out
        end = -((-(i + 1) * L_in) // L_out)     # ceil((i+1)*L_in / L_out)
        bounds.append((start, end))
    return tuple(bounds)


# ---------------------------------------------------------------------------
# Pallas kernel
# ---------------------------------------------------------------------------
def _multiscale_kernel(x_ref, w3_ref, w5_ref, w7_ref, wac_ref, bac_ref, o_ref,
                       *, dil, length, pool_size, in_channels, batch_tile,
                       kernel_sizes):
    L, S, Cin, TB = length, pool_size, in_channels, batch_tile
    k_max = max(kernel_sizes)

    # Resident weights, read once per grid step.
    weights = [w_ref[...].astype(jnp.float32)
               for w_ref in (w3_ref, w5_ref, w7_ref)]          # (Cpl, K*Cin)
    wac = wac_ref[...].astype(jnp.float32)                      # (Cout2, 3*Cpl)
    bac = bac_ref[...].astype(jnp.float32)                      # (Cout2, 1)

    # Static adaptive-pool windows per scale (trace-time python).
    bounds = [_adaptive_pool_bounds(L - dil * (K - 1), S) for K in kernel_sizes]

    # Zero pad so the shared im2col's deepest tap stays in-bounds; padded /
    # out-of-range conv columns are simply never read by the pooling slices.
    zpad = jnp.zeros((Cin, (k_max - 1) * dil), dtype=jnp.float32)

    pooled_batches = []
    for b in range(TB):                      # short static loop -> unrolled
        xb = x_ref[b].astype(jnp.float32)                        # (Cin, L)
        xbp = jnp.concatenate([xb, zpad], axis=1)                # (Cin, L+(kmax-1)*dil)
        # Shared im2col, tap-major rows; scale K consumes the row prefix [:K*Cin].
        col = jnp.concatenate(
            [xbp[:, t * dil: t * dil + L] for t in range(k_max)], axis=0)  # (kmax*Cin, L)

        parts = []
        for w_im, K, bnds in zip(weights, kernel_sizes, bounds):
            y = jnp.dot(w_im, col[:K * Cin, :],
                        preferred_element_type=jnp.float32)      # (Cpl, L)
            # Adaptive max pool: S narrow static window maxes (bias folded out).
            parts.append(jnp.concatenate(
                [jnp.max(y[:, lo:hi], axis=-1, keepdims=True) for lo, hi in bnds],
                axis=1))                                          # (Cpl, S)
        pooled_batches.append(jnp.concatenate(parts, axis=0))     # (3*Cpl, S)

    cat = jnp.concatenate(pooled_batches, axis=1)                 # (3*Cpl, TB*S)
    # Single 1x1 "after_concat" matmul; bias already includes folded conv biases.
    out = jnp.dot(wac, cat, preferred_element_type=jnp.float32) + bac  # (Cout2, TB*S)
    # TODO(synk): use_act=True path (sigmoid(adaptive_avg_pool1d(x,1)) * out) is
    #             not implemented; module default is use_act=False.
    for b in range(TB):
        o_ref[b] = out[:, b * S:(b + 1) * S].astype(o_ref.dtype)


def multiscale_forward(x, params, *, out_shape, dil_rate=1, batch_tile=None):
    """x: (B, Cin, L) float32. params: (w3,b3,w5,b5,w7,b7,wac,bac)."""
    B, Cin, L = x.shape
    w3, b3, w5, b5, w7, b7, wac, bac = params
    Cpl = w3.shape[0]                     # channels_per_layer
    Cout2 = wac.shape[0]                  # channels_per_layer // 2
    S = out_shape
    for K in _KERNEL_SIZES:
        assert L - dil_rate * (K - 1) >= 1, "input length too short for kernel/dilation"

    TB = batch_tile if batch_tile is not None else min(B, _MAX_BATCH_TILE)
    G = -(-B // TB)
    B_pad = G * TB
    x_pad = x if B_pad == B else jnp.pad(x, ((0, B_pad - B), (0, 0), (0, 0)))

    # Host-side parameter prep (tiny): tap-major im2col conv weights, and an
    # effective after_concat bias with the per-scale conv biases folded in.
    w_ims = [jnp.transpose(w, (0, 2, 1)).reshape(Cpl, K * Cin)
             for w, K in zip((w3, w5, w7), _KERNEL_SIZES)]
    b_cat = jnp.concatenate([b3.reshape(Cpl, 1), b5.reshape(Cpl, 1),
                             b7.reshape(Cpl, 1)], axis=0)         # (3*Cpl, 1)
    bac_eff = wac @ b_cat + bac.reshape(Cout2, 1)                 # (Cout2, 1)

    kernel = functools.partial(
        _multiscale_kernel, dil=dil_rate, length=L, pool_size=S,
        in_channels=Cin, batch_tile=TB, kernel_sizes=_KERNEL_SIZES)

    def const_spec(a):      # resident across grid steps (constant index_map)
        return pl.BlockSpec(a.shape, lambda g: (0, 0))

    out = pl.pallas_call(
        kernel,
        out_shape=jax.ShapeDtypeStruct((B_pad, Cout2, S), x.dtype),
        grid=(G,),
        in_specs=[
            pl.BlockSpec((TB, Cin, L), lambda g: (g, 0, 0)),
            const_spec(w_ims[0]), const_spec(w_ims[1]), const_spec(w_ims[2]),
            const_spec(wac), const_spec(bac_eff),
        ],
        out_specs=pl.BlockSpec((TB, Cout2, S), lambda g: (g, 0, 0)),
        compiler_params=pltpu.CompilerParams(
            dimension_semantics=("parallel",),
            vmem_limit_bytes=32 * 1024 * 1024),
    )(x_pad, w_ims[0], w_ims[1], w_ims[2], wac, bac_eff)

    return out[:B]


# ---------------------------------------------------------------------------
# Pure-JAX reference (independent of kernel math) for correctness checking
# ---------------------------------------------------------------------------
def _ref_adaptive_max_pool(y, out_shape):
    L_in = y.shape[-1]
    cols = [jnp.max(y[..., s:e], axis=-1, keepdims=True)
            for (s, e) in _adaptive_pool_bounds(L_in, out_shape)]
    return jnp.concatenate(cols, axis=-1)


def ref_forward(x, params, *, out_shape, dil_rate=1):
    w3, b3, w5, b5, w7, b7, wac, bac = params

    def conv(w, b):
        y = jax.lax.conv_general_dilated(
            x, w, window_strides=(1,), padding="VALID",
            rhs_dilation=(dil_rate,),
            dimension_numbers=("NCH", "OIH", "NCH"))
        return y + b[None, :, :]

    p3 = _ref_adaptive_max_pool(conv(w3, b3), out_shape)
    p5 = _ref_adaptive_max_pool(conv(w5, b5), out_shape)
    p7 = _ref_adaptive_max_pool(conv(w7, b7), out_shape)
    cat = jnp.concatenate([p3, p5, p7], axis=1)              # (B, 3*Cpl, S)
    return jnp.einsum("oc,bcs->bos", wac, cat) + bac[None, :, :]


# ---------------------------------------------------------------------------
# main
# ---------------------------------------------------------------------------
if __name__ == "__main__":
    B, Cin, L = 2, 4, 16
    channels_per_layer = 8
    out_shape = 4
    dil_rate = 1
    Cout2 = channels_per_layer // 2

    key = jax.random.PRNGKey(0)
    keys = jax.random.split(key, 10)

    def init(k, shape, scale=0.1):
        return (scale * jax.random.normal(k, shape)).astype(jnp.float32)

    w3 = init(keys[0], (channels_per_layer, Cin, 5))
    b3 = init(keys[1], (channels_per_layer, 1))
    w5 = init(keys[2], (channels_per_layer, Cin, 6))
    b5 = init(keys[3], (channels_per_layer, 1))
    w7 = init(keys[4], (channels_per_layer, Cin, 9))
    b7 = init(keys[5], (channels_per_layer, 1))
    wac = init(keys[6], (Cout2, 3 * channels_per_layer))
    bac = init(keys[7], (Cout2, 1))
    params = (w3, b3, w5, b5, w7, b7, wac, bac)

    # Case 1: small batch (single grid step, blocks == full dims).
    x = jax.random.normal(keys[8], (B, Cin, L), dtype=jnp.float32)
    out = jax.block_until_ready(
        multiscale_forward(x, params, out_shape=out_shape, dil_rate=dil_rate))
    ref = jax.block_until_ready(
        ref_forward(x, params, out_shape=out_shape, dil_rate=dil_rate))
    assert out.shape == (B, Cout2, out_shape), out.shape
    assert jnp.allclose(out, ref, atol=1e-4, rtol=1e-4), (
        float(jnp.max(jnp.abs(out - ref))))

    # Case 2: batch larger than the tile -> multi-step grid + batch padding.
    B2 = 10
    x2 = jax.random.normal(keys[9], (B2, Cin, L), dtype=jnp.float32)
    out2 = jax.block_until_ready(
        multiscale_forward(x2, params, out_shape=out_shape, dil_rate=dil_rate))
    ref2 = jax.block_until_ready(
        ref_forward(x2, params, out_shape=out_shape, dil_rate=dil_rate))
    assert out2.shape == (B2, Cout2, out_shape), out2.shape
    assert jnp.allclose(out2, ref2, atol=1e-4, rtol=1e-4), (
        float(jnp.max(jnp.abs(out2 - ref2))))

    print("KERNEL_OK")
</pallas_src>

<mosaic_0001>
module attributes {stable_mosaic.version = 11 : i64} {
  func.func @_multiscale_kernel(%arg0: i32, %arg1: memref<2x4x16xf32, #tpu.memory_space<vmem>>, %arg2: memref<8x20xf32, #tpu.memory_space<vmem>>, %arg3: memref<8x24xf32, #tpu.memory_space<vmem>>, %arg4: memref<8x36xf32, #tpu.memory_space<vmem>>, %arg5: memref<4x24xf32, #tpu.memory_space<vmem>>, %arg6: memref<4x1xf32, #tpu.memory_space<vmem>>, %arg7: memref<2x4x4xf32, #tpu.memory_space<vmem>>) attributes {dimension_semantics = [#tpu.dimension_semantics<parallel>], iteration_bounds = array<i64: 1>, scalar_prefetch = 0 : i64, scratch_operands = 0 : i64, tpu.core_type = #tpu.core_type<tc>, window_params = [{transform_indices = @transform_0, window_bounds = array<i64: 2, 4, 16>}, {pipeline_mode = #tpu.pipeline_mode<synchronous>, transform_indices = @transform_1, window_bounds = array<i64: 8, 20>}, {pipeline_mode = #tpu.pipeline_mode<synchronous>, transform_indices = @transform_2, window_bounds = array<i64: 8, 24>}, {pipeline_mode = #tpu.pipeline_mode<synchronous>, transform_indices = @transform_3, window_bounds = array<i64: 8, 36>}, {pipeline_mode = #tpu.pipeline_mode<synchronous>, transform_indices = @transform_4, window_bounds = array<i64: 4, 24>}, {pipeline_mode = #tpu.pipeline_mode<synchronous>, transform_indices = @transform_5, window_bounds = array<i64: 4, 1>}, {transform_indices = @transform_6, window_bounds = array<i64: 2, 4, 4>}]} {
    %c0 = arith.constant 0 : index
    %c0_0 = arith.constant 0 : index
    %0 = vector.load %arg2[%c0, %c0_0] : memref<8x20xf32, #tpu.memory_space<vmem>>, vector<8x20xf32>
    %c0_1 = arith.constant 0 : index
    %c0_2 = arith.constant 0 : index
    %1 = vector.load %arg3[%c0_1, %c0_2] : memref<8x24xf32, #tpu.memory_space<vmem>>, vector<8x24xf32>
    %c0_3 = arith.constant 0 : index
    %c0_4 = arith.constant 0 : index
    %2 = vector.load %arg4[%c0_3, %c0_4] : memref<8x36xf32, #tpu.memory_space<vmem>>, vector<8x36xf32>
    %c0_5 = arith.constant 0 : index
    %c0_6 = arith.constant 0 : index
    %3 = vector.load %arg5[%c0_5, %c0_6] : memref<4x24xf32, #tpu.memory_space<vmem>>, vector<4x24xf32>
    %c0_7 = arith.constant 0 : index
    %c0_8 = arith.constant 0 : index
    %4 = vector.load %arg6[%c0_7, %c0_8] : memref<4x1xf32, #tpu.memory_space<vmem>>, vector<4x1xf32>
    %cst = arith.constant 0.000000e+00 : f32
    %5 = vector.broadcast %cst : f32 to vector<4x8xf32>
    %c0_9 = arith.constant 0 : index
    %c0_10 = arith.constant 0 : index
    %c0_11 = arith.constant 0 : index
    %6 = vector.load %arg1[%c0_9, %c0_10, %c0_11] : memref<2x4x16xf32, #tpu.memory_space<vmem>>, vector<1x4x16xf32>
    %7 = vector.shape_cast %6 : vector<1x4x16xf32> to vector<4x16xf32>
    %8 = tpu.concatenate %7, %5 in 1 : vector<4x16xf32>, vector<4x8xf32> -> vector<4x24xf32>
    %9 = vector.extract_strided_slice %8 {offsets = [0, 0], sizes = [4, 16], strides = [1, 1]} : vector<4x24xf32> to vector<4x16xf32>
    %10 = vector.extract_strided_slice %8 {offsets = [0, 1], sizes = [4, 16], strides = [1, 1]} : vector<4x24xf32> to vector<4x16xf32>
    %11 = vector.extract_strided_slice %8 {offsets = [0, 2], sizes = [4, 16], strides = [1, 1]} : vector<4x24xf32> to vector<4x16xf32>
    %12 = vector.extract_strided_slice %8 {offsets = [0, 3], sizes = [4, 16], strides = [1, 1]} : vector<4x24xf32> to vector<4x16xf32>
    %13 = vector.extract_strided_slice %8 {offsets = [0, 4], sizes = [4, 16], strides = [1, 1]} : vector<4x24xf32> to vector<4x16xf32>
    %14 = vector.extract_strided_slice %8 {offsets = [0, 5], sizes = [4, 16], strides = [1, 1]} : vector<4x24xf32> to vector<4x16xf32>
    %15 = vector.extract_strided_slice %8 {offsets = [0, 6], sizes = [4, 16], strides = [1, 1]} : vector<4x24xf32> to vector<4x16xf32>
    %16 = vector.extract_strided_slice %8 {offsets = [0, 7], sizes = [4, 16], strides = [1, 1]} : vector<4x24xf32> to vector<4x16xf32>
    %17 = vector.extract_strided_slice %8 {offsets = [0, 8], sizes = [4, 16], strides = [1, 1]} : vector<4x24xf32> to vector<4x16xf32>
    %18 = tpu.concatenate %9, %10, %11, %12, %13, %14, %15, %16, %17 in 0 : vector<4x16xf32>, vector<4x16xf32>, vector<4x16xf32>, vector<4x16xf32>, vector<4x16xf32>, vector<4x16xf32>, vector<4x16xf32>, vector<4x16xf32>, vector<4x16xf32> -> vector<36x16xf32>
    %19 = vector.extract_strided_slice %18 {offsets = [0, 0], sizes = [20, 16], strides = [1, 1]} : vector<36x16xf32> to vector<20x16xf32>
    %cst_12 = arith.constant dense<0.000000e+00> : vector<8x16xf32>
    %20 = tpu.matmul %0, %19, %cst_12 {dimension_numbers = #tpu.dot_dimension_numbers<[1], [0], [0], [1], [0, 0, 1, 1], [], []>} : vector<8x20xf32>, vector<20x16xf32>, vector<8x16xf32> -> vector<8x16xf32>
    %21 = vector.extract_strided_slice %20 {offsets = [0, 0], sizes = [8, 3], strides = [1, 1]} : vector<8x16xf32> to vector<8x3xf32>
    %cst_13 = arith.constant dense<0xFF800000> : vector<8xf32>
    %22 = vector.multi_reduction <maximumf>, %21, %cst_13 [1] : vector<8x3xf32> to vector<8xf32>
    %23 = vector.shape_cast %22 : vector<8xf32> to vector<8x1xf32>
    %24 = vector.extract_strided_slice %20 {offsets = [0, 3], sizes = [8, 3], strides = [1, 1]} : vector<8x16xf32> to vector<8x3xf32>
    %cst_14 = arith.constant dense<0xFF800000> : vector<8xf32>
    %25 = vector.multi_reduction <maximumf>, %24, %cst_14 [1] : vector<8x3xf32> to vector<8xf32>
    %26 = vector.shape_cast %25 : vector<8xf32> to vector<8x1xf32>
    %27 = vector.extract_strided_slice %20 {offsets = [0, 6], sizes = [8, 3], strides = [1, 1]} : vector<8x16xf32> to vector<8x3xf32>
    %cst_15 = arith.constant dense<0xFF800000> : vector<8xf32>
    %28 = vector.multi_reduction <maximumf>, %27, %cst_15 [1] : vector<8x3xf32> to vector<8xf32>
    %29 = vector.shape_cast %28 : vector<8xf32> to vector<8x1xf32>
    %30 = vector.extract_strided_slice %20 {offsets = [0, 9], sizes = [8, 3], strides = [1, 1]} : vector<8x16xf32> to vector<8x3xf32>
    %cst_16 = arith.constant dense<0xFF800000> : vector<8xf32>
    %31 = vector.multi_reduction <maximumf>, %30, %cst_16 [1] : vector<8x3xf32> to vector<8xf32>
    %32 = vector.shape_cast %31 : vector<8xf32> to vector<8x1xf32>
    %33 = tpu.concatenate %23, %26, %29, %32 in 1 : vector<8x1xf32>, vector<8x1xf32>, vector<8x1xf32>, vector<8x1xf32> -> vector<8x4xf32>
    %34 = vector.extract_strided_slice %18 {offsets = [0, 0], sizes = [24, 16], strides = [1, 1]} : vector<36x16xf32> to vector<24x16xf32>
    %cst_17 = arith.constant dense<0.000000e+00> : vector<8x16xf32>
    %35 = tpu.matmul %1, %34, %cst_17 {dimension_numbers = #tpu.dot_dimension_numbers<[1], [0], [0], [1], [0, 0, 1, 1], [], []>} : vector<8x24xf32>, vector<24x16xf32>, vector<8x16xf32> -> vector<8x16xf32>
    %36 = vector.extract_strided_slice %35 {offsets = [0, 0], sizes = [8, 3], strides = [1, 1]} : vector<8x16xf32> to vector<8x3xf32>
    %cst_18 = arith.constant dense<0xFF800000> : vector<8xf32>
    %37 = vector.multi_reduction <maximumf>, %36, %cst_18 [1] : vector<8x3xf32> to vector<8xf32>
    %38 = vector.shape_cast %37 : vector<8xf32> to vector<8x1xf32>
    %39 = vector.extract_strided_slice %35 {offsets = [0, 2], sizes = [8, 4], strides = [1, 1]} : vector<8x16xf32> to vector<8x4xf32>
    %cst_19 = arith.constant dense<0xFF800000> : vector<8xf32>
    %40 = vector.multi_reduction <maximumf>, %39, %cst_19 [1] : vector<8x4xf32> to vector<8xf32>
    %41 = vector.shape_cast %40 : vector<8xf32> to vector<8x1xf32>
    %42 = vector.extract_strided_slice %35 {offsets = [0, 5], sizes = [8, 4], strides = [1, 1]} : vector<8x16xf32> to vector<8x4xf32>
    %cst_20 = arith.constant dense<0xFF800000> : vector<8xf32>
    %43 = vector.multi_reduction <maximumf>, %42, %cst_20 [1] : vector<8x4xf32> to vector<8xf32>
    %44 = vector.shape_cast %43 : vector<8xf32> to vector<8x1xf32>
    %45 = vector.extract_strided_slice %35 {offsets = [0, 8], sizes = [8, 3], strides = [1, 1]} : vector<8x16xf32> to vector<8x3xf32>
    %cst_21 = arith.constant dense<0xFF800000> : vector<8xf32>
    %46 = vector.multi_reduction <maximumf>, %45, %cst_21 [1] : vector<8x3xf32> to vector<8xf32>
    %47 = vector.shape_cast %46 : vector<8xf32> to vector<8x1xf32>
    %48 = tpu.concatenate %38, %41, %44, %47 in 1 : vector<8x1xf32>, vector<8x1xf32>, vector<8x1xf32>, vector<8x1xf32> -> vector<8x4xf32>
    %cst_22 = arith.constant dense<0.000000e+00> : vector<8x16xf32>
    %49 = tpu.matmul %2, %18, %cst_22 {dimension_numbers = #tpu.dot_dimension_numbers<[1], [0], [0], [1], [0, 0, 1, 1], [], []>} : vector<8x36xf32>, vector<36x16xf32>, vector<8x16xf32> -> vector<8x16xf32>
    %50 = vector.extract_strided_slice %49 {offsets = [0, 0], sizes = [8, 2], strides = [1, 1]} : vector<8x16xf32> to vector<8x2xf32>
    %cst_23 = arith.constant dense<0xFF800000> : vector<8xf32>
    %51 = vector.multi_reduction <maximumf>, %50, %cst_23 [1] : vector<8x2xf32> to vector<8xf32>
    %52 = vector.shape_cast %51 : vector<8xf32> to vector<8x1xf32>
    %53 = vector.extract_strided_slice %49 {offsets = [0, 2], sizes = [8, 2], strides = [1, 1]} : vector<8x16xf32> to vector<8x2xf32>
    %cst_24 = arith.constant dense<0xFF800000> : vector<8xf32>
    %54 = vector.multi_reduction <maximumf>, %53, %cst_24 [1] : vector<8x2xf32> to vector<8xf32>
    %55 = vector.shape_cast %54 : vector<8xf32> to vector<8x1xf32>
    %56 = vector.extract_strided_slice %49 {offsets = [0, 4], sizes = [8, 2], strides = [1, 1]} : vector<8x16xf32> to vector<8x2xf32>
    %cst_25 = arith.constant dense<0xFF800000> : vector<8xf32>
    %57 = vector.multi_reduction <maximumf>, %56, %cst_25 [1] : vector<8x2xf32> to vector<8xf32>
    %58 = vector.shape_cast %57 : vector<8xf32> to vector<8x1xf32>
    %59 = vector.extract_strided_slice %49 {offsets = [0, 6], sizes = [8, 2], strides = [1, 1]} : vector<8x16xf32> to vector<8x2xf32>
    %cst_26 = arith.constant dense<0xFF800000> : vector<8xf32>
    %60 = vector.multi_reduction <maximumf>, %59, %cst_26 [1] : vector<8x2xf32> to vector<8xf32>
    %61 = vector.shape_cast %60 : vector<8xf32> to vector<8x1xf32>
    %62 = tpu.concatenate %52, %55, %58, %61 in 1 : vector<8x1xf32>, vector<8x1xf32>, vector<8x1xf32>, vector<8x1xf32> -> vector<8x4xf32>
    %63 = tpu.concatenate %33, %48, %62 in 0 : vector<8x4xf32>, vector<8x4xf32>, vector<8x4xf32> -> vector<24x4xf32>
    %c1 = arith.constant 1 : index
    %c0_27 = arith.constant 0 : index
    %c0_28 = arith.constant 0 : index
    %64 = vector.load %arg1[%c1, %c0_27, %c0_28] : memref<2x4x16xf32, #tpu.memory_space<vmem>>, vector<1x4x16xf32>
    %65 = vector.shape_cast %64 : vector<1x4x16xf32> to vector<4x16xf32>
    %66 = tpu.concatenate %65, %5 in 1 : vector<4x16xf32>, vector<4x8xf32> -> vector<4x24xf32>
    %67 = vector.extract_strided_slice %66 {offsets = [0, 0], sizes = [4, 16], strides = [1, 1]} : vector<4x24xf32> to vector<4x16xf32>
    %68 = vector.extract_strided_slice %66 {offsets = [0, 1], sizes = [4, 16], strides = [1, 1]} : vector<4x24xf32> to vector<4x16xf32>
    %69 = vector.extract_strided_slice %66 {offsets = [0, 2], sizes = [4, 16], strides = [1, 1]} : vector<4x24xf32> to vector<4x16xf32>
    %70 = vector.extract_strided_slice %66 {offsets = [0, 3], sizes = [4, 16], strides = [1, 1]} : vector<4x24xf32> to vector<4x16xf32>
    %71 = vector.extract_strided_slice %66 {offsets = [0, 4], sizes = [4, 16], strides = [1, 1]} : vector<4x24xf32> to vector<4x16xf32>
    %72 = vector.extract_strided_slice %66 {offsets = [0, 5], sizes = [4, 16], strides = [1, 1]} : vector<4x24xf32> to vector<4x16xf32>
    %73 = vector.extract_strided_slice %66 {offsets = [0, 6], sizes = [4, 16], strides = [1, 1]} : vector<4x24xf32> to vector<4x16xf32>
    %74 = vector.extract_strided_slice %66 {offsets = [0, 7], sizes = [4, 16], strides = [1, 1]} : vector<4x24xf32> to vector<4x16xf32>
    %75 = vector.extract_strided_slice %66 {offsets = [0, 8], sizes = [4, 16], strides = [1, 1]} : vector<4x24xf32> to vector<4x16xf32>
    %76 = tpu.concatenate %67, %68, %69, %70, %71, %72, %73, %74, %75 in 0 : vector<4x16xf32>, vector<4x16xf32>, vector<4x16xf32>, vector<4x16xf32>, vector<4x16xf32>, vector<4x16xf32>, vector<4x16xf32>, vector<4x16xf32>, vector<4x16xf32> -> vector<36x16xf32>
    %77 = vector.extract_strided_slice %76 {offsets = [0, 0], sizes = [20, 16], strides = [1, 1]} : vector<36x16xf32> to vector<20x16xf32>
    %cst_29 = arith.constant dense<0.000000e+00> : vector<8x16xf32>
    %78 = tpu.matmul %0, %77, %cst_29 {dimension_numbers = #tpu.dot_dimension_numbers<[1], [0], [0], [1], [0, 0, 1, 1], [], []>} : vector<8x20xf32>, vector<20x16xf32>, vector<8x16xf32> -> vector<8x16xf32>
    %79 = vector.extract_strided_slice %78 {offsets = [0, 0], sizes = [8, 3], strides = [1, 1]} : vector<8x16xf32> to vector<8x3xf32>
    %cst_30 = arith.constant dense<0xFF800000> : vector<8xf32>
    %80 = vector.multi_reduction <maximumf>, %79, %cst_30 [1] : vector<8x3xf32> to vector<8xf32>
    %81 = vector.shape_cast %80 : vector<8xf32> to vector<8x1xf32>
    %82 = vector.extract_strided_slice %78 {offsets = [0, 3], sizes = [8, 3], strides = [1, 1]} : vector<8x16xf32> to vector<8x3xf32>
    %cst_31 = arith.constant dense<0xFF800000> : vector<8xf32>
    %83 = vector.multi_reduction <maximumf>, %82, %cst_31 [1] : vector<8x3xf32> to vector<8xf32>
    %84 = vector.shape_cast %83 : vector<8xf32> to vector<8x1xf32>
    %85 = vector.extract_strided_slice %78 {offsets = [0, 6], sizes = [8, 3], strides = [1, 1]} : vector<8x16xf32> to vector<8x3xf32>
    %cst_32 = arith.constant dense<0xFF800000> : vector<8xf32>
    %86 = vector.multi_reduction <maximumf>, %85, %cst_32 [1] : vector<8x3xf32> to vector<8xf32>
    %87 = vector.shape_cast %86 : vector<8xf32> to vector<8x1xf32>
    %88 = vector.extract_strided_slice %78 {offsets = [0, 9], sizes = [8, 3], strides = [1, 1]} : vector<8x16xf32> to vector<8x3xf32>
    %cst_33 = arith.constant dense<0xFF800000> : vector<8xf32>
    %89 = vector.multi_reduction <maximumf>, %88, %cst_33 [1] : vector<8x3xf32> to vector<8xf32>
    %90 = vector.shape_cast %89 : vector<8xf32> to vector<8x1xf32>
    %91 = tpu.concatenate %81, %84, %87, %90 in 1 : vector<8x1xf32>, vector<8x1xf32>, vector<8x1xf32>, vector<8x1xf32> -> vector<8x4xf32>
    %92 = vector.extract_strided_slice %76 {offsets = [0, 0], sizes = [24, 16], strides = [1, 1]} : vector<36x16xf32> to vector<24x16xf32>
    %cst_34 = arith.constant dense<0.000000e+00> : vector<8x16xf32>
    %93 = tpu.matmul %1, %92, %cst_34 {dimension_numbers = #tpu.dot_dimension_numbers<[1], [0], [0], [1], [0, 0, 1, 1], [], []>} : vector<8x24xf32>, vector<24x16xf32>, vector<8x16xf32> -> vector<8x16xf32>
    %94 = vector.extract_strided_slice %93 {offsets = [0, 0], sizes = [8, 3], strides = [1, 1]} : vector<8x16xf32> to vector<8x3xf32>
    %cst_35 = arith.constant dense<0xFF800000> : vector<8xf32>
    %95 = vector.multi_reduction <maximumf>, %94, %cst_35 [1] : vector<8x3xf32> to vector<8xf32>
    %96 = vector.shape_cast %95 : vector<8xf32> to vector<8x1xf32>
    %97 = vector.extract_strided_slice %93 {offsets = [0, 2], sizes = [8, 4], strides = [1, 1]} : vector<8x16xf32> to vector<8x4xf32>
    %cst_36 = arith.constant dense<0xFF800000> : vector<8xf32>
    %98 = vector.multi_reduction <maximumf>, %97, %cst_36 [1] : vector<8x4xf32> to vector<8xf32>
    %99 = vector.shape_cast %98 : vector<8xf32> to vector<8x1xf32>
    %100 = vector.extract_strided_slice %93 {offsets = [0, 5], sizes = [8, 4], strides = [1, 1]} : vector<8x16xf32> to vector<8x4xf32>
    %cst_37 = arith.constant dense<0xFF800000> : vector<8xf32>
    %101 = vector.multi_reduction <maximumf>, %100, %cst_37 [1] : vector<8x4xf32> to vector<8xf32>
    %102 = vector.shape_cast %101 : vector<8xf32> to vector<8x1xf32>
    %103 = vector.extract_strided_slice %93 {offsets = [0, 8], sizes = [8, 3], strides = [1, 1]} : vector<8x16xf32> to vector<8x3xf32>
    %cst_38 = arith.constant dense<0xFF800000> : vector<8xf32>
    %104 = vector.multi_reduction <maximumf>, %103, %cst_38 [1] : vector<8x3xf32> to vector<8xf32>
    %105 = vector.shape_cast %104 : vector<8xf32> to vector<8x1xf32>
    %106 = tpu.concatenate %96, %99, %102, %105 in 1 : vector<8x1xf32>, vector<8x1xf32>, vector<8x1xf32>, vector<8x1xf32> -> vector<8x4xf32>
    %cst_39 = arith.constant dense<0.000000e+00> : vector<8x16xf32>
    %107 = tpu.matmul %2, %76, %cst_39 {dimension_numbers = #tpu.dot_dimension_numbers<[1], [0], [0], [1], [0, 0, 1, 1], [], []>} : vector<8x36xf32>, vector<36x16xf32>, vector<8x16xf32> -> vector<8x16xf32>
    %108 = vector.extract_strided_slice %107 {offsets = [0, 0], sizes = [8, 2], strides = [1, 1]} : vector<8x16xf32> to vector<8x2xf32>
    %cst_40 = arith.constant dense<0xFF800000> : vector<8xf32>
    %109 = vector.multi_reduction <maximumf>, %108, %cst_40 [1] : vector<8x2xf32> to vector<8xf32>
    %110 = vector.shape_cast %109 : vector<8xf32> to vector<8x1xf32>
    %111 = vector.extract_strided_slice %107 {offsets = [0, 2], sizes = [8, 2], strides = [1, 1]} : vector<8x16xf32> to vector<8x2xf32>
    %cst_41 = arith.constant dense<0xFF800000> : vector<8xf32>
    %112 = vector.multi_reduction <maximumf>, %111, %cst_41 [1] : vector<8x2xf32> to vector<8xf32>
    %113 = vector.shape_cast %112 : vector<8xf32> to vector<8x1xf32>
    %114 = vector.extract_strided_slice %107 {offsets = [0, 4], sizes = [8, 2], strides = [1, 1]} : vector<8x16xf32> to vector<8x2xf32>
    %cst_42 = arith.constant dense<0xFF800000> : vector<8xf32>
    %115 = vector.multi_reduction <maximumf>, %114, %cst_42 [1] : vector<8x2xf32> to vector<8xf32>
    %116 = vector.shape_cast %115 : vector<8xf32> to vector<8x1xf32>
    %117 = vector.extract_strided_slice %107 {offsets = [0, 6], sizes = [8, 2], strides = [1, 1]} : vector<8x16xf32> to vector<8x2xf32>
    %cst_43 = arith.constant dense<0xFF800000> : vector<8xf32>
    %118 = vector.multi_reduction <maximumf>, %117, %cst_43 [1] : vector<8x2xf32> to vector<8xf32>
    %119 = vector.shape_cast %118 : vector<8xf32> to vector<8x1xf32>
    %120 = tpu.concatenate %110, %113, %116, %119 in 1 : vector<8x1xf32>, vector<8x1xf32>, vector<8x1xf32>, vector<8x1xf32> -> vector<8x4xf32>
    %121 = tpu.concatenate %91, %106, %120 in 0 : vector<8x4xf32>, vector<8x4xf32>, vector<8x4xf32> -> vector<24x4xf32>
    %122 = tpu.concatenate %63, %121 in 1 : vector<24x4xf32>, vector<24x4xf32> -> vector<24x8xf32>
    %cst_44 = arith.constant dense<0.000000e+00> : vector<4x8xf32>
    %123 = tpu.matmul %3, %122, %cst_44 {dimension_numbers = #tpu.dot_dimension_numbers<[1], [0], [0], [1], [0, 0, 1, 1], [], []>} : vector<4x24xf32>, vector<24x8xf32>, vector<4x8xf32> -> vector<4x8xf32>
    %124 = vector.broadcast %4 : vector<4x1xf32> to vector<4x8xf32>
    %125 = arith.addf %123, %124 : vector<4x8xf32>
    %126 = vector.extract_strided_slice %125 {offsets = [0, 0], sizes = [4, 4], strides = [1, 1]} : vector<4x8xf32> to vector<4x4xf32>
    %c0_45 = arith.constant 0 : index
    %c0_46 = arith.constant 0 : index
    %c0_47 = arith.constant 0 : index
    %127 = vector.load %arg7[%c0_45, %c0_46, %c0_47] : memref<2x4x4xf32, #tpu.memory_space<vmem>>, vector<1x4x4xf32>
    %128 = vector.shape_cast %127 : vector<1x4x4xf32> to vector<4x4xf32>
    %129 = vector.shape_cast %126 : vector<4x4xf32> to vector<1x4x4xf32>
    tpu.vector_store %arg7[%c0_45, %c0_46, %c0_47], %129 {strides = array<i32>} : memref<2x4x4xf32, #tpu.memory_space<vmem>>, vector<1x4x4xf32>,
    %130 = vector.extract_strided_slice %125 {offsets = [0, 4], sizes = [4, 4], strides = [1, 1]} : vector<4x8xf32> to vector<4x4xf32>
    %c1_48 = arith.constant 1 : index
    %c0_49 = arith.constant 0 : index
    %c0_50 = arith.constant 0 : index
    %131 = vector.load %arg7[%c1_48, %c0_49, %c0_50] : memref<2x4x4xf32, #tpu.memory_space<vmem>>, vector<1x4x4xf32>
    %132 = vector.shape_cast %131 : vector<1x4x4xf32> to vector<4x4xf32>
    %133 = vector.shape_cast %130 : vector<4x4xf32> to vector<1x4x4xf32>
    tpu.vector_store %arg7[%c1_48, %c0_49, %c0_50], %133 {strides = array<i32>} : memref<2x4x4xf32, #tpu.memory_space<vmem>>, vector<1x4x4xf32>,
    return
  }
  func.func @transform_0(%arg0: i32) -> (i32, i32, i32) {
    %c0_i32 = arith.constant 0 : i32
    %c0_i32_0 = arith.constant 0 : i32
    %c0_i32_1 = arith.constant 0 : i32
    return %arg0, %c0_i32, %c0_i32_0 : i32, i32, i32
  }
  func.func @transform_1(%arg0: i32) -> (i32, i32) {
    %c0_i32 = arith.constant 0 : i32
    %c0_i32_0 = arith.constant 0 : i32
    %c0_i32_1 = arith.constant 0 : i32
    return %c0_i32, %c0_i32_0 : i32, i32
  }
  func.func @transform_2(%arg0: i32) -> (i32, i32) {
    %c0_i32 = arith.constant 0 : i32
    %c0_i32_0 = arith.constant 0 : i32
    %c0_i32_1 = arith.constant 0 : i32
    return %c0_i32, %c0_i32_0 : i32, i32
  }
  func.func @transform_3(%arg0: i32) -> (i32, i32) {
    %c0_i32 = arith.constant 0 : i32
    %c0_i32_0 = arith.constant 0 : i32
    %c0_i32_1 = arith.constant 0 : i32
    return %c0_i32, %c0_i32_0 : i32, i32
  }
  func.func @transform_4(%arg0: i32) -> (i32, i32) {
    %c0_i32 = arith.constant 0 : i32
    %c0_i32_0 = arith.constant 0 : i32
    %c0_i32_1 = arith.constant 0 : i32
    return %c0_i32, %c0_i32_0 : i32, i32
  }
  func.func @transform_5(%arg0: i32) -> (i32, i32) {
    %c0_i32 = arith.constant 0 : i32
    %c0_i32_0 = arith.constant 0 : i32
    %c0_i32_1 = arith.constant 0 : i32
    return %c0_i32, %c0_i32_0 : i32, i32
  }
  func.func @transform_6(%arg0: i32) -> (i32, i32, i32) {
    %c0_i32 = arith.constant 0 : i32
    %c0_i32_0 = arith.constant 0 : i32
    %c0_i32_1 = arith.constant 0 : i32
    return %arg0, %c0_i32, %c0_i32_0 : i32, i32, i32
  }
}

</mosaic_0001>

<bundles_post_ra>
// kernel: tpu_custom_call.1
= control target key start
LH: loop header
LB: loop body
LE: loop exit
PB: predicated region body
PF: predicated region fallthrough
CT: control target
= control target key end

     0   :  { %11 = vsyncpa [#allocation3], 0  ;;  %s788_s0 = inlined_call_operand.hbm [shape: f32[2,4,16], index: 0, kind: input, shape index: {}]   ;;  %s789_s1 = inlined_call_operand.hbm [shape: f32[8,20], index: 1, kind: input, shape index: {}]   ;;  %s790_s2 = inlined_call_operand.hbm [shape: f32[8,24], index: 2, kind: input, shape index: {}]   ;;  %s791_s3 = inlined_call_operand.hbm [shape: f32[8,36], index: 3, kind: input, shape index: {}]   ;;  %s792_s4 = inlined_call_operand.vmem [shape: f32[4,24], index: 4, kind: input, shape index: {}]   ;;  %s793_s5 = inlined_call_operand.vmem [shape: f32[4,1], index: 5, kind: input, shape index: {}]   ;;  %s794_s6 = inlined_call_operand.hbm [shape: f32[2,4,4], index: 6, kind: output, shape index: {}]  }
   0x1   :  { %12 = vsyncpa [#allocation6], 0 }
   0x2   :  { %13 = vsyncpa [#allocation9], 0  ;;  %s33_s23 = sshll.u32 %s789_s1, 4  ;;  %s34_s23 = int_to_ptr.hbm [resolvable:$true] %s33_s23 }
   0x3   :  { %14 = vsyncpa [#allocation4], 0  ;;  %s635_s24 = smov [#allocation5]   ;;  %s19_s28 = sshll.u32 %s788_s0, 4  ;;  %s20_s28 = int_to_ptr.hbm [resolvable:$true] %s19_s28 }
   0x4   :  { %s35_s25 = sshll.u32 %s635_s24, 4  ;;  %s636_s29 = smov [#allocation2]   ;;  %s36_s25 = int_to_ptr.vmem [resolvable:$true] %s35_s25 }
   0x5   :  { %38 = dma.hbm_to_vmem [thread:$0]  %s34_s23, 128, %s36_s25, [#allocation6]  }
   0x6   :  { %s21_s30 = sshll.u32 %s636_s29, 4  ;;  %s637_s7 = smov 64   ;;  %s22_s30 = int_to_ptr.vmem [resolvable:$true] %s21_s30 }
   0x7   :  { %s638_s8 = smov 4   ;;  %s44_s10 = sshll.u32 %s790_s2, 4  ;;  %s45_s10 = int_to_ptr.hbm [resolvable:$true] %s44_s10 }
   0x8   :  { %27 = dma.hbm_to_vmem [thread:$0]  %s20_s28, 128, %s22_s30, [#allocation3], %s637_s7, %s637_s7, %s638_s8  }
   0x9   :  { %s639_s11 = smov [#allocation7]   ;;  %s55_s14 = sshll.u32 %s791_s3, 4  ;;  %s56_s14 = int_to_ptr.hbm [resolvable:$true] %s55_s14 }
   0xa   :  { %s46_s12 = sshll.u32 %s639_s11, 4  ;;  %s640_s15 = smov [#allocation8]   ;;  %s47_s12 = int_to_ptr.vmem [resolvable:$true] %s46_s12 }
   0xb   :  { %49 = dma.hbm_to_vmem [thread:$0]  %s45_s10, 128, %s47_s12, [#allocation6]  }
   0xc   :  { %s57_s16 = sshll.u32 %s640_s15, 4  ;;  %s58_s16 = int_to_ptr.vmem [resolvable:$true] %s57_s16 }
   0xd   :  { %60 = dma.hbm_to_vmem [thread:$0]  %s56_s14, 128, %s58_s16, [#allocation9]  }
   0xe   :  { %627 = dma.done.wait [#allocation3], 128  }
   0xf   :  { %628 = vsyncadd [#allocation3], 4294967168 }
  0x10   :  { %629 = dma.done.wait [#allocation6], 256  }
  0x11   :  { %630 = vsyncadd [#allocation6], 4294967040 }
  0x12   :  { %631 = dma.done.wait [#allocation9], 128  }
  0x13   :  { %632 = vsyncadd [#allocation9], 4294967168  ;;  %vm87_vm0 = vcmask 130048   ;;  %v86_v0 = vld [vmem:[#allocation2] sm:$0xf]  ;;  %s641_s2 = smov 124  }
  0x14   :  { %v254_v1 = vld [vmem:[#allocation2 + $0x4] sm:$0xf]  ;;  %v88_v2 = vsel %vm87_vm0, %v86_v0, 0.0  ;;  %s642_s3 = smov 120   ;;  %s643_s17 = smov 126   ;;  %vm114_vm1 = vcmask 1043456  }
  0x15   :  { %v701_v3 = vsel %vm87_vm0, %v254_v1, 0.0  ;;  %100 = vrot.lane.b32.xlu0 %v88_v2, %s641_s2  ;;  %v90_v5 = vrot.slane %v88_v2, 4  ;;  %s644_s18 = smov 123   ;;  %s645_s19 = smov 127   ;;  %v82_v18 = vld [vmem:[#allocation7] sm:$0xff]  ;;  %vm167_vm2 = vcmask 195584  }
  0x16   :  { %v495_v4 = vpack.i.bf16 %v701_v3, %v88_v2  ;;  %279 = vrot.lane.b32.xlu2 %v701_v3, %s642_s3  ;;  %s646_s20 = smov 125   ;;  %v257_v6 = vrot.slane %v701_v3, 4  ;;  %s647_s21 = smov 122   ;;  %v81_v19 = vld [vmem:[#allocation5] sm:$0xff]  ;;  %vm119_vm3 = vcmask 162816   ;;  %v83_v30 = vld [vmem:[#allocation8] sm:$0xff] }
  0x17   :  { %s648_s22 = smov 121   ;;  %vm209_vm4 = vcmask 293888   ;;  %vm242_vm5 = vcmask 48160   ;;  %vm150_vm6 = vcmask 48152   ;;  %vm146_vm7 = vcmask 23552   ;;  %s650_s26 = smov [#allocation10]  }
  0x18   :  { %496 = vrot.lane.b32.xlu1 %v495_v4, %s643_s17  ;;  %vm238_vm8 = vcmask 31760   ;;  %vm164_vm9 = vcmask 15360   ;;  %vm198_vm10 = vcmask 72744   ;;  %vm246_vm11 = vcmask 64560   ;;  %s451_s27 = sshll.u32 %s650_s26, 4  ;;  %s453_s30 = sshll.u32 %s794_s6, 4  ;;  %s452_s27 = int_to_ptr.vmem [resolvable:$true] %s451_s27  ;;  %s454_s30 = int_to_ptr.hbm [resolvable:$true] %s453_s30 }
  0x19   :  { %vm194_vm12 = vcmask 48144   ;;  %vm202_vm13 = vcmask 89152   ;;  %vm158_vm14 = vcmask 97352   ;;  %vm154_vm15 = vcmask 72752  }
  0x1a   :  { %vm162_vm0 = vcmask 7168  }
  0x1d   :  { %103 = vrot.lane.b32.xlu0 %v90_v5, %s644_s18 }
  0x1e   :  { %91 = vrot.lane.b32.xlu2 %v90_v5, %s645_s19 }
  0x20   :  { %97 = vrot.lane.b32.xlu1 %v90_v5, %s646_s20 }
  0x25   :  { %267 = vrot.lane.b32.xlu0 %v701_v3, %s641_s2 }
  0x26   :  { %273 = vrot.lane.b32.xlu2 %v701_v3, %s647_s21 }
  0x28   :  { %270 = vrot.lane.b32.xlu1 %v257_v6, %s644_s18 }
  0x2d   :  { %276 = vrot.lane.b32.xlu0 %v257_v6, %s648_s22 }
  0x2e   :  { %258 = vrot.lane.b32.xlu2 %v257_v6, %s645_s19 }
  0x30   :  { %264 = vrot.lane.b32.xlu1 %v257_v6, %s646_s20 }
  0x35   :  { %112 = vrot.lane.b32.xlu0 %v88_v2, %s642_s3 }
  0x36   :  { %109 = vrot.lane.b32.xlu2 %v90_v5, %s648_s22 }
  0x38   :  { %106 = vrot.lane.b32.xlu1 %v88_v2, %s647_s21 }
  0x70   :  { %v280_v7 = vpop.permute.xlu2 %279 }
  0x78   :  { %v92_v10 = vpop.permute.xlu2 %91 }
  0x79   :  { %v115_v16 = vsel %vm114_vm1, %v88_v2, %v92_v10 }
  0x80   :  { %v274_v17 = vpop.permute.xlu2 %273 }
  0x87   :  { %v101_v8 = vpop.permute.xlu0 %100 }
  0x88   :  { %v259_v23 = vpop.permute.xlu2 %258 }
  0x89   :  { %v281_v29 = vsel %vm114_vm1, %v701_v3, %v259_v23 }
  0x8a   :  { %v497_v9 = vpop.permute.xlu1 %496 }
  0x8b   :  { %v498_v12 = vunpack.i.l.bf16 %v497_v9  ;;  %v499_v25 = vunpack.i.h.bf16 %v497_v9 }
  0x8f   :  { %v104_v11 = vpop.permute.xlu0 %103 }
  0x90   :  { %v117_v13 = vsel %vm114_vm1, %v101_v8, %v104_v11  ;;  %v110_v32 = vpop.permute.xlu2 %109 }
  0x91   :  { %468 = vmatpush.msk.msra.mxu0 %vm114_vm1, %v117_v13  ;;  %184 = vmatpush.msra.mxu1 %v117_v13 }
  0x92   :  { %v98_v14 = vpop.permute.xlu1 %97 }
  0x93   :  { %v116_v15 = vsel %vm114_vm1, %v498_v12, %v98_v14 }
  0x94   :  { %140 = vmatpush.msra.mxu0 %v116_v15  ;;  %185 = vmatpush.msra.mxu1 %v116_v15 }
  0x96   :  { %186 = vmatpush.msra.mxu1 %v115_v16  ;;  %141 = vmatpush.msra.mxu0 %v115_v16 }
  0x97   :  { %469 = vmatmul.msk.f32.vlgmr.msra.gmra.mxu0 %vm119_vm3, %v81_v19  ;;  %v268_v20 = vpop.permute.xlu0 %267  ;;  %470 = vmatmul.msk.f32.vlgmr.msra.gmra.mxu1 %vm167_vm2, %v82_v18 }
  0x98   :  { %476 = vmatpush.msk.msrb.mxu1 %vm114_vm1, %v280_v7 }
  0x9a   :  { %v271_v21 = vpop.permute.xlu1 %270 }
  0x9b   :  { %v283_v22 = vsel %vm114_vm1, %v268_v20, %v271_v21 }
  0x9c   :  { %473 = vmatpush.msk.msra.mxu3 %vm114_vm1, %v283_v22  ;;  %336 = vmatpush.msrb.mxu0 %v283_v22 }
  0x9f   :  { %v277_v24 = vpop.permute.xlu0 %276 }
  0xa0   :  { %v284_v26 = vsel %vm114_vm1, %v274_v17, %v277_v24 }
  0xa1   :  { %372 = vmatpush.msrb.mxu1 %v284_v26 }
  0xa2   :  { %v265_v27 = vpop.permute.xlu1 %264 }
  0xa3   :  { %v282_v28 = vsel %vm114_vm1, %v499_v25, %v265_v27  ;;  %373 = vmatpush.msrb.mxu1 %v283_v22 }
  0xa4   :  { %302 = vmatpush.msra.mxu3 %v282_v28  ;;  %337 = vmatpush.msrb.mxu0 %v282_v28 }
  0xa5   :  { %374 = vmatpush.msrb.mxu1 %v282_v28  ;;  %v85_v28 = vld [vmem:[%s793_s5] sm:$0xf] }
  0xa6   :  { %303 = vmatpush.msra.mxu3 %v281_v29  ;;  %338 = vmatpush.msrb.mxu0 %v281_v29 }
  0xa7   :  { %474 = vmatmul.msk.f32.vlgmr.msra.gmra.mxu3 %vm119_vm3, %v81_v19  ;;  %v113_v31 = vpop.permute.xlu0 %112  ;;  %475 = vmatmul.msk.f32.vlgmr.msrb.gmra.mxu0 %vm167_vm2, %v82_v18  ;;  %vm439_vm3 = vcmask 27648  }
  0xa8   :  { %375 = vmatpush.msrb.mxu1 %v281_v29  ;;  %471 = vmatpush.msk.msra.mxu2 %vm114_vm1, %v113_v31  ;;  %v649_v29 = vmov 0  }
  0xa9   :  { %477 = vmatmul.msk.f32.vlgmr.msrb.gmra.mxu1 %vm209_vm4, %v83_v30  ;;  %505 = vset.pattern.permute.xlu2 %v649_v29 }
  0xaa   :  { %v107_v33 = vpop.permute.xlu1 %106  ;;  %506 = vset.pattern.permute.xlu0 %v649_v29 }
  0xab   :  { %v118_v34 = vsel %vm114_vm1, %v107_v33, %v110_v32  ;;  %vm407_vm1 = vcmask 31744  }
  0xac   :  { %227 = vmatpush.msra.mxu2 %v118_v34 }
  0xae   :  { %228 = vmatpush.msra.mxu2 %v117_v13 }
  0xb0   :  { %229 = vmatpush.msra.mxu2 %v116_v15 }
  0xb2   :  { %230 = vmatpush.msra.mxu2 %v115_v16 }
  0xb3   :  { %472 = vmatmul.msk.f32.vlgmr.msra.gmra.mxu2 %vm209_vm4, %v83_v30 }
 0x114   :  { %v188_v35 = vpop.f32.mrf.mxu1  ;;  %v143_v36 = vpop.f32.mrf.mxu0 }
 0x115   :  { %v191_v52 = vsel %vm146_vm7, %v188_v35, -inf  ;;  %v195_v53 = vsel %vm194_vm12, %v188_v35, -inf  ;;  %v151_v54 = vsel %vm150_vm6, %v143_v36, -inf  ;;  %v199_v56 = vsel %vm198_vm10, %v188_v35, -inf }
 0x116   :  { %v147_v58 = vsel %vm146_vm7, %v143_v36, -inf  ;;  %v203_v59 = vsel %vm202_vm13, %v188_v35, -inf  ;;  %v155_v63 = vsel %vm154_vm15, %v143_v36, -inf  ;;  %v159_v0 = vsel %vm158_vm14, %v143_v36, -inf }
 0x124   :  { %v340_v42 = vpop.f32.mrf.mxu0 }
 0x125   :  { %v343_v43 = vsel %vm146_vm7, %v340_v42, -inf  ;;  %v349_v46 = vsel %vm198_vm10, %v340_v42, -inf  ;;  %v346_v48 = vsel %vm194_vm12, %v340_v42, -inf  ;;  %v352_v49 = vsel %vm202_vm13, %v340_v42, -inf }
 0x126   :  { %v377_v37 = vpop.f32.mrf.mxu1 }
 0x127   :  { %v386_v38 = vsel %vm242_vm5, %v377_v37, -inf  ;;  %v383_v44 = vsel %vm238_vm8, %v377_v37, -inf  ;;  %v380_v45 = vsel %vm164_vm9, %v377_v37, -inf  ;;  %v389_v47 = vsel %vm246_vm11, %v377_v37, -inf }
 0x128   :  { %387 = vmax.xlane.f32.xlu2 %v386_v38 }
 0x12a   :  { %v305_v39 = vpop.f32.mrf.mxu3 }
 0x12b   :  { %v311_v40 = vsel %vm150_vm6, %v305_v39, -inf  ;;  %v308_v41 = vsel %vm146_vm7, %v305_v39, -inf  ;;  %v317_v50 = vsel %vm158_vm14, %v305_v39, -inf  ;;  %v314_v51 = vsel %vm154_vm15, %v305_v39, -inf }
 0x12c   :  { %312 = vmax.xlane.f32.xlu1 %v311_v40  ;;  %309 = vmax.xlane.f32.xlu0 %v308_v41 }
 0x130   :  { %344 = vmax.xlane.f32.xlu2 %v343_v43 }
 0x134   :  { %384 = vmax.xlane.f32.xlu1 %v383_v44  ;;  %381 = vmax.xlane.f32.xlu0 %v380_v45 }
 0x136   :  { %v232_v55 = vpop.f32.mrf.mxu2 }
 0x137   :  { %v243_v57 = vsel %vm242_vm5, %v232_v55, -inf  ;;  %v247_v60 = vsel %vm246_vm11, %v232_v55, -inf  ;;  %v239_v61 = vsel %vm238_vm8, %v232_v55, -inf  ;;  %v235_v62 = vsel %vm164_vm9, %v232_v55, -inf }
 0x138   :  { %350 = vmax.xlane.f32.xlu2 %v349_v46 }
 0x13c   :  { %390 = vmax.xlane.f32.xlu1 %v389_v47  ;;  %347 = vmax.xlane.f32.xlu0 %v346_v48 }
 0x140   :  { %353 = vmax.xlane.f32.xlu2 %v352_v49 }
 0x144   :  { %318 = vmax.xlane.f32.xlu1 %v317_v50  ;;  %315 = vmax.xlane.f32.xlu0 %v314_v51 }
 0x148   :  { %192 = vmax.xlane.f32.xlu2 %v191_v52  ;;  %v84_v52 = vld [vmem:[%s792_s4] sm:$0xf] }
 0x14c   :  { %196 = vmax.xlane.f32.xlu0 %v195_v53  ;;  %152 = vmax.xlane.f32.xlu1 %v151_v54 }
 0x150   :  { %200 = vmax.xlane.f32.xlu2 %v199_v56 }
 0x154   :  { %244 = vmax.xlane.f32.xlu1 %v243_v57  ;;  %148 = vmax.xlane.f32.xlu0 %v147_v58 }
 0x158   :  { %204 = vmax.xlane.f32.xlu2 %v203_v59 }
 0x15c   :  { %248 = vmax.xlane.f32.xlu1 %v247_v60  ;;  %240 = vmax.xlane.f32.xlu0 %v239_v61 }
 0x160   :  { %236 = vmax.xlane.f32.xlu2 %v235_v62 }
 0x164   :  { %156 = vmax.xlane.f32.xlu1 %v155_v63 }
 0x168   :  { %160 = vmax.xlane.f32.xlu2 %v159_v0 }
 0x180   :  { %413 = vperm.xlu2 %505, %v85_v28  }
 0x19b   :  { %v388_v1 = vpop.xlane.xlu2 %387 }
 0x19f   :  { %v313_v2 = vpop.xlane.xlu1 %312  ;;  %v310_v3 = vpop.xlane.xlu0 %309 }
 0x1a0   :  { %v320_v18 = vsel %vm162_vm0, %v310_v3, %v313_v2 }
 0x1a3   :  { %v345_v4 = vpop.xlane.xlu2 %344 }
 0x1a7   :  { %v385_v5 = vpop.xlane.xlu1 %384  ;;  %v382_v6 = vpop.xlane.xlu0 %381 }
 0x1a8   :  { %v392_v10 = vsel %vm162_vm0, %v382_v6, %v385_v5 }
 0x1a9   :  { %v393_v12 = vsel %vm164_vm9, %v392_v10, %v388_v1 }
 0x1ab   :  { %v351_v7 = vpop.xlane.xlu2 %350 }
 0x1af   :  { %v391_v8 = vpop.xlane.xlu1 %390  ;;  %v348_v9 = vpop.xlane.xlu0 %347 }
 0x1b0   :  { %v355_v11 = vsel %vm162_vm0, %v345_v4, %v348_v9  ;;  %v394_v15 = vsel %vm146_vm7, %v393_v12, %v391_v8 }
 0x1b1   :  { %v356_v13 = vsel %vm164_vm9, %v355_v11, %v351_v7 }
 0x1b3   :  { %v354_v14 = vpop.xlane.xlu2 %353 }
 0x1b4   :  { %v357_v16 = vsel %vm146_vm7, %v356_v13, %v354_v14 }
 0x1b5   :  { %v500_v17 = vpack.i.bf16 %v357_v16, %v394_v15 }
 0x1b7   :  { %v319_v19 = vpop.xlane.xlu1 %318  ;;  %v316_v20 = vpop.xlane.xlu0 %315  ;;  %501 = vrot.lane.b32.xlu0 %v500_v17, %s638_s8 }
 0x1b8   :  { %v321_v21 = vsel %vm164_vm9, %v320_v18, %v316_v20 }
 0x1b9   :  { %v322_v22 = vsel %vm146_vm7, %v321_v21, %v319_v19 }
 0x1ba   :  { %398 = vrot.lane.b32.xlu1 %v322_v22, %s638_s8 }
 0x1bb   :  { %v193_v23 = vpop.xlane.xlu2 %192 }
 0x1bf   :  { %v153_v24 = vpop.xlane.xlu1 %152  ;;  %v197_v26 = vpop.xlane.xlu0 %196 }
 0x1c0   :  { %v206_v41 = vsel %vm162_vm0, %v193_v23, %v197_v26 }
 0x1c3   :  { %v201_v25 = vpop.xlane.xlu2 %200 }
 0x1c4   :  { %v207_v43 = vsel %vm164_vm9, %v206_v41, %v201_v25 }
 0x1c7   :  { %v245_v27 = vpop.xlane.xlu1 %244  ;;  %v149_v31 = vpop.xlane.xlu0 %148 }
 0x1c8   :  { %v163_v46 = vsel %vm162_vm0, %v149_v31, %v153_v24 }
 0x1cb   :  { %v205_v30 = vpop.xlane.xlu2 %204 }
 0x1cc   :  { %v208_v47 = vsel %vm146_vm7, %v207_v43, %v205_v30 }
 0x1cf   :  { %v249_v32 = vpop.xlane.xlu1 %248  ;;  %v241_v33 = vpop.xlane.xlu0 %240 }
 0x1d3   :  { %v237_v34 = vpop.xlane.xlu2 %236 }
 0x1d4   :  { %v250_v36 = vsel %vm162_vm0, %v237_v34, %v241_v33 }
 0x1d5   :  { %v251_v37 = vsel %vm164_vm9, %v250_v36, %v245_v27 }
 0x1d6   :  { %v252_v42 = vsel %vm146_vm7, %v251_v37, %v249_v32 }
 0x1d7   :  { %v157_v35 = vpop.xlane.xlu1 %156 }
 0x1d8   :  { %v165_v49 = vsel %vm164_vm9, %v163_v46, %v157_v35 }
 0x1db   :  { %v161_v44 = vpop.xlane.xlu2 %160 }
 0x1dc   :  { %v166_v51 = vsel %vm146_vm7, %v165_v49, %v161_v44 }
 0x1e3   :  { %v414_v54 = vpop.permute.xlu2 %413 }
 0x229   :  { %v502_v38 = vpop.permute.xlu0 %501 }
 0x22a   :  { %v504_v39 = vunpack.i.h.bf16 %v502_v38  ;;  %v503_v40 = vunpack.i.l.bf16 %v502_v38 }
 0x22c   :  { %v410_v45 = vsel %vm407_vm1, %v252_v42, %v503_v40  ;;  %v399_v48 = vpop.permute.xlu1 %398  ;;  %v409_v50 = vsel %vm407_vm1, %v208_v47, %v504_v39 }
 0x22d   :  { %432 = vmatpush.msrb.mxu3 %v410_v45  ;;  %v408_v53 = vsel %vm407_vm1, %v166_v51, %v399_v48 }
 0x22f   :  { %433 = vmatpush.msrb.mxu3 %v409_v50 }
 0x231   :  { %434 = vmatpush.msrb.mxu3 %v408_v53 }
 0x232   :  { %478 = vmatmul.msk.f32.vlgmr.msrb.gmra.mxu3 %vm167_vm2, %v84_v52 }
 0x2b5   :  { %v436_v55 = vpop.f32.mrf.mxu3 }
 0x2b6   :  { %v437_v56 = vadd.f32 %v436_v55, %v414_v54 }
 0x2b8   :  { %442 = vrot.lane.b32.xlu0 %v437_v56, %s641_s2  ;;  %440 = vst.msk [vmem:[#allocation10] sm:$0xf] %vm439_vm3, %v437_v56 }
 0x32a   :  { %v443_v57 = vpop.permute.xlu0 %442 }
 0x32b   :  { %446 = vst.msk [vmem:[#allocation10 + $0x4] sm:$0xf] %vm439_vm3, %v443_v57 }
 0x32c   :  { %459 = dma.vmem_to_hbm [thread:$0]  %s452_s27, 128, %s454_s30, [#allocation4], %s637_s7, %s637_s7, %s638_s8  }
 0x32d   :  { %633 = dma.done.wait [#allocation4], 128  }
 0x32e   :  { %634 = vsyncadd [#allocation4], 4294967168 }
 0x32f   :  { %464 = vsyncpa [#allocation3], 1 }
 0x330   :  { %465 = vsyncpa [#allocation6], 1 }
 0x331   :  { %466 = vsyncpa [#allocation9], 1 }
 0x332   :  { %467 = vsyncpa [#allocation4], 1 }

</bundles_post_ra>
